<compile_context>
chip_gen: v7x
topology: tpu7x:2x2x1
jax: 0.10.0
libtpu: 0.0.40
codegen_flags: <defaults>
</compile_context>

<pallas_src>
import functools

import jax
import jax.numpy as jnp
from jax.experimental import pallas as pl
from jax.experimental.pallas import tpu as pltpu


def _round_up(x, m):
    return ((x + m - 1) // m) * m


def gated_transition_kernel(
    zeps_ref,              # (TM, 2*z_dim) = [z_t_1 | eps]
    w1_ref, b1_ref,        # fused layer-1: [gate_w1 | pm_w1 | mu_w]
    w2_ref, b2_ref,        # fused 128-aligned block-diag layer-2
    lw_ref, lb_ref,        # z_to_logvar
    out_ref,               # (TM, round_up(3*z_dim, 128)) = [z_t | mu | logvar | pad]
):
    z_dim = zeps_ref.shape[1] // 2
    two_trans = w2_ref.shape[0]                 # 2 * trans_dim
    gate_block = w2_ref.shape[1] // 2           # 128-aligned column block width

    zeps = zeps_ref[...]
    z = zeps[:, :z_dim]
    eps = zeps[:, z_dim:].astype(jnp.float32)

    # Fused layer 1: columns are [gate hidden | pm hidden | z_to_mu(z)]
    h1 = jnp.dot(z, w1_ref[...], preferred_element_type=jnp.float32) + b1_ref[...]
    h_gp = jnp.maximum(h1[:, :two_trans], 0.0)  # ReLU on gate + pm hiddens
    z_mu = h1[:, two_trans:two_trans + z_dim]   # z_to_mu(z), no activation

    # Fused layer 2 (block-diagonal, 128-lane-aligned column blocks):
    # columns [0:z_dim] = gate logits, [gate_block:gate_block+z_dim] = proposed mean
    h2 = (jnp.dot(h_gp.astype(w2_ref.dtype), w2_ref[...],
                  preferred_element_type=jnp.float32) + b2_ref[...])
    gate = jax.nn.sigmoid(h2[:, :z_dim])
    proposed = h2[:, gate_block:gate_block + z_dim]

    # mu = (1 - gate) * z_to_mu(z) + gate * proposed_mean
    mu = (1.0 - gate) * z_mu + gate * proposed

    # logvar = z_to_logvar(ReLU(proposed_mean))
    logvar = (jnp.dot(jnp.maximum(proposed, 0.0).astype(lw_ref.dtype), lw_ref[...],
                      preferred_element_type=jnp.float32) + lb_ref[...])

    # reparameterization: z_t = mu + eps * exp(0.5 * logvar)
    z_t = mu + eps * jnp.exp(0.5 * logvar)

    # Single lane-dense full-width store: [z_t | mu | logvar | zero pad]
    pad_cols = out_ref.shape[1] - 3 * z_dim
    pieces = [z_t, mu, logvar]
    if pad_cols:
        pieces.append(jnp.zeros((z_t.shape[0], pad_cols), jnp.float32))
    out_ref[...] = jnp.concatenate(pieces, axis=-1).astype(out_ref.dtype)


def _pick_tm(B):
    """Batch-tile size: multiple of 8, capped at 4096, >=2 tiles for big B."""
    TM_CAP = 4096
    if B <= 1024:
        return _round_up(B, 8)
    # split into at least 2 tiles so ("parallel",) can shard across v7x's 2 TCs
    return min(_round_up(pl.cdiv(B, 2), 8), TM_CAP)


def gated_transition(z_t_1, eps, fused, compute_dtype=jnp.float32):
    """fused: dict from fuse_params(). Returns (z_t, mu, logvar)."""
    B, z_dim = z_t_1.shape
    out_width = _round_up(3 * z_dim, 128)

    TM = _pick_tm(B)
    grid = (pl.cdiv(B, TM),)

    # One input slab = [z_t_1 | eps]  -> one DMA stream per batch tile.
    zeps = jnp.concatenate([z_t_1, eps], axis=-1).astype(compute_dtype)

    w1 = fused["w1"].astype(compute_dtype)
    b1 = fused["b1"]
    w2 = fused["w2"].astype(compute_dtype)
    b2 = fused["b2"]
    lw = fused["lv_w"].astype(compute_dtype)
    lb = fused["lv_b"]

    def resident(arr):
        # Full-array block with constant index map -> stays in VMEM across
        # grid steps (weights are not re-DMA'd per batch tile).
        return pl.BlockSpec(arr.shape, lambda i: (0, 0))

    out = pl.pallas_call(
        gated_transition_kernel,
        out_shape=jax.ShapeDtypeStruct((B, out_width), jnp.float32),
        grid=grid,
        in_specs=[
            pl.BlockSpec((TM, 2 * z_dim), lambda i: (i, 0)),   # [z | eps] slab
            resident(w1), resident(b1),
            resident(w2), resident(b2),
            resident(lw), resident(lb),
        ],
        out_specs=pl.BlockSpec((TM, out_width), lambda i: (i, 0)),
        compiler_params=pltpu.CompilerParams(
            dimension_semantics=("parallel",)),
    )(zeps, w1, b1, w2, b2, lw, lb)

    z_t = out[:, 0:z_dim]
    mu = out[:, z_dim:2 * z_dim]
    logvar = out[:, 2 * z_dim:3 * z_dim]
    return z_t, mu, logvar


def init_params(key, z_dim, trans_dim):
    """Synthetic init mirroring the PyTorch module shapes.
    Weights stored pre-transposed as (in, out); biases as (1, out)."""
    ks = jax.random.split(key, 8)

    def lin(k, fan_in, fan_out):
        bound = 1.0 / jnp.sqrt(fan_in)
        kw, kb = jax.random.split(k)
        w = jax.random.uniform(kw, (fan_in, fan_out), jnp.float32, -bound, bound)
        b = jax.random.uniform(kb, (1, fan_out), jnp.float32, -bound, bound)
        return w, b

    gate_w1, gate_b1 = lin(ks[0], z_dim, trans_dim)
    gate_w2, gate_b2 = lin(ks[1], trans_dim, z_dim)
    pm_w1, pm_b1 = lin(ks[2], z_dim, trans_dim)
    pm_w2, pm_b2 = lin(ks[3], trans_dim, z_dim)
    # z_to_mu: weight = identity, bias = zeros (as in the PyTorch __init__)
    mu_w = jnp.eye(z_dim, dtype=jnp.float32)
    mu_b = jnp.zeros((1, z_dim), jnp.float32)
    lv_w, lv_b = lin(ks[4], z_dim, z_dim)
    return dict(
        gate_w1=gate_w1, gate_b1=gate_b1, gate_w2=gate_w2, gate_b2=gate_b2,
        pm_w1=pm_w1, pm_b1=pm_b1, pm_w2=pm_w2, pm_b2=pm_b2,
        mu_w=mu_w, mu_b=mu_b, lv_w=lv_w, lv_b=lv_b,
    )


def fuse_params(p):
    """Build the fused weights consumed by the kernel (done once, off-kernel).
    NOTE: expects weights already transposed to (in, out) layout — real
    PyTorch nn.Linear weights are (out, in) and must be .T'd first."""
    trans_dim = p["gate_w1"].shape[1]
    z_dim = p["gate_w2"].shape[1]
    gate_block = _round_up(z_dim, 128)   # 128-lane-aligned column block width

    # Layer 1: (z_dim, 2*trans_dim + z_dim) = [gate_w1 | pm_w1 | mu_w]
    w1 = jnp.concatenate([p["gate_w1"], p["pm_w1"], p["mu_w"]], axis=1)
    b1 = jnp.concatenate([p["gate_b1"], p["pm_b1"], p["mu_b"]], axis=1)

    # Layer 2: block-diagonal (2*trans_dim, 2*gate_block), each output block
    # zero-padded to a 128-lane boundary so slices start vreg-aligned.
    def pad_cols(w, width):
        pad = width - w.shape[1]
        return jnp.pad(w, ((0, 0), (0, pad))) if pad else w

    gate_w2p = pad_cols(p["gate_w2"], gate_block)
    pm_w2p = pad_cols(p["pm_w2"], gate_block)
    zeros = jnp.zeros((trans_dim, gate_block), jnp.float32)
    w2 = jnp.concatenate([
        jnp.concatenate([gate_w2p, zeros], axis=1),
        jnp.concatenate([zeros, pm_w2p], axis=1),
    ], axis=0)
    b2 = jnp.concatenate([pad_cols(p["gate_b2"], gate_block),
                          pad_cols(p["pm_b2"], gate_block)], axis=1)
    return dict(w1=w1, b1=b1, w2=w2, b2=b2, lv_w=p["lv_w"], lv_b=p["lv_b"])


def reference(z, eps, p):
    """Pure-JAX reference of the PyTorch forward (non-fused params)."""
    h_g = jnp.maximum(z @ p["gate_w1"] + p["gate_b1"], 0.0)
    gate = jax.nn.sigmoid(h_g @ p["gate_w2"] + p["gate_b2"])
    h_p = jnp.maximum(z @ p["pm_w1"] + p["pm_b1"], 0.0)
    proposed = h_p @ p["pm_w2"] + p["pm_b2"]
    z_mu = z @ p["mu_w"] + p["mu_b"]
    mu = (1.0 - gate) * z_mu + gate * proposed
    logvar = jnp.maximum(proposed, 0.0) @ p["lv_w"] + p["lv_b"]
    z_t = mu + eps * jnp.exp(0.5 * logvar)
    return z_t, mu, logvar


def _check(z, eps, params, fused):
    z_t, mu, logvar = gated_transition(z, eps, fused)
    jax.block_until_ready((z_t, mu, logvar))
    z_t_ref, mu_ref, logvar_ref = reference(z, eps, params)
    assert jnp.allclose(z_t, z_t_ref, atol=1e-5, rtol=1e-5)
    assert jnp.allclose(mu, mu_ref, atol=1e-5, rtol=1e-5)
    assert jnp.allclose(logvar, logvar_ref, atol=1e-5, rtol=1e-5)


if __name__ == "__main__":
    z_dim, trans_dim = 32, 64

    key = jax.random.PRNGKey(0)
    k_params, k_z, k_eps, k_z2, k_eps2 = jax.random.split(key, 5)

    params = init_params(k_params, z_dim, trans_dim)
    fused = fuse_params(params)

    # Small shape consistent with the module (single-step grid).
    batch = 8
    z_t_1 = jax.random.normal(k_z, (batch, z_dim), jnp.float32)
    eps = jax.random.normal(k_eps, (batch, z_dim), jnp.float32)  # replaces torch.randn
    _check(z_t_1, eps, params, fused)

    # Medium batch exercising the multi-step "parallel" grid path (2 tiles).
    batch2 = 2048
    z_t_1b = jax.random.normal(k_z2, (batch2, z_dim), jnp.float32)
    eps_b = jax.random.normal(k_eps2, (batch2, z_dim), jnp.float32)
    _check(z_t_1b, eps_b, params, fused)

    print("KERNEL_OK")
</pallas_src>

<mosaic_0001>
module attributes {stable_mosaic.version = 11 : i64} {
  func.func @gated_transition_kernel(%arg0: i32, %arg1: memref<8x64xf32, #tpu.memory_space<vmem>>, %arg2: memref<32x160xf32, #tpu.memory_space<vmem>>, %arg3: memref<1x160xf32, #tpu.memory_space<vmem>>, %arg4: memref<128x256xf32, #tpu.memory_space<vmem>>, %arg5: memref<1x256xf32, #tpu.memory_space<vmem>>, %arg6: memref<32x32xf32, #tpu.memory_space<vmem>>, %arg7: memref<1x32xf32, #tpu.memory_space<vmem>>, %arg8: memref<8x128xf32, #tpu.memory_space<vmem>>) attributes {dimension_semantics = [#tpu.dimension_semantics<parallel>], iteration_bounds = array<i64: 1>, scalar_prefetch = 0 : i64, scratch_operands = 0 : i64, tpu.core_type = #tpu.core_type<tc>, window_params = [{transform_indices = @transform_0, window_bounds = array<i64: 8, 64>}, {pipeline_mode = #tpu.pipeline_mode<synchronous>, transform_indices = @transform_1, window_bounds = array<i64: 32, 160>}, {pipeline_mode = #tpu.pipeline_mode<synchronous>, transform_indices = @transform_2, window_bounds = array<i64: 1, 160>}, {pipeline_mode = #tpu.pipeline_mode<synchronous>, transform_indices = @transform_3, window_bounds = array<i64: 128, 256>}, {pipeline_mode = #tpu.pipeline_mode<synchronous>, transform_indices = @transform_4, window_bounds = array<i64: 1, 256>}, {pipeline_mode = #tpu.pipeline_mode<synchronous>, transform_indices = @transform_5, window_bounds = array<i64: 32, 32>}, {pipeline_mode = #tpu.pipeline_mode<synchronous>, transform_indices = @transform_6, window_bounds = array<i64: 1, 32>}, {transform_indices = @transform_7, window_bounds = array<i64: 8, 128>}]} {
    %c0 = arith.constant 0 : index
    %c0_0 = arith.constant 0 : index
    %0 = vector.load %arg1[%c0, %c0_0] : memref<8x64xf32, #tpu.memory_space<vmem>>, vector<8x64xf32>
    %1 = vector.extract_strided_slice %0 {offsets = [0, 0], sizes = [8, 32], strides = [1, 1]} : vector<8x64xf32> to vector<8x32xf32>
    %2 = vector.extract_strided_slice %0 {offsets = [0, 32], sizes = [8, 32], strides = [1, 1]} : vector<8x64xf32> to vector<8x32xf32>
    %c0_1 = arith.constant 0 : index
    %c0_2 = arith.constant 0 : index
    %3 = vector.load %arg2[%c0_1, %c0_2] : memref<32x160xf32, #tpu.memory_space<vmem>>, vector<32x160xf32>
    %cst = arith.constant dense<0.000000e+00> : vector<8x160xf32>
    %4 = tpu.matmul %1, %3, %cst {dimension_numbers = #tpu.dot_dimension_numbers<[1], [0], [0], [1], [0, 0, 1, 1], [], []>} : vector<8x32xf32>, vector<32x160xf32>, vector<8x160xf32> -> vector<8x160xf32>
    %c0_3 = arith.constant 0 : index
    %c0_4 = arith.constant 0 : index
    %5 = vector.load %arg3[%c0_3, %c0_4] : memref<1x160xf32, #tpu.memory_space<vmem>>, vector<1x160xf32>
    %6 = vector.broadcast %5 : vector<1x160xf32> to vector<8x160xf32>
    %7 = arith.addf %4, %6 : vector<8x160xf32>
    %8 = vector.extract_strided_slice %7 {offsets = [0, 0], sizes = [8, 128], strides = [1, 1]} : vector<8x160xf32> to vector<8x128xf32>
    %cst_5 = arith.constant 0.000000e+00 : f32
    %9 = vector.broadcast %cst_5 : f32 to vector<8x128xf32>
    %10 = arith.maximumf %8, %9 : vector<8x128xf32>
    %11 = vector.extract_strided_slice %7 {offsets = [0, 128], sizes = [8, 32], strides = [1, 1]} : vector<8x160xf32> to vector<8x32xf32>
    %c0_6 = arith.constant 0 : index
    %c0_7 = arith.constant 0 : index
    %12 = vector.load %arg4[%c0_6, %c0_7] : memref<128x256xf32, #tpu.memory_space<vmem>>, vector<128x256xf32>
    %cst_8 = arith.constant dense<0.000000e+00> : vector<8x256xf32>
    %13 = tpu.matmul %10, %12, %cst_8 {dimension_numbers = #tpu.dot_dimension_numbers<[1], [0], [0], [1], [0, 0, 1, 1], [], []>} : vector<8x128xf32>, vector<128x256xf32>, vector<8x256xf32> -> vector<8x256xf32>
    %c0_9 = arith.constant 0 : index
    %c0_10 = arith.constant 0 : index
    %14 = vector.load %arg5[%c0_9, %c0_10] : memref<1x256xf32, #tpu.memory_space<vmem>>, vector<1x256xf32>
    %15 = vector.broadcast %14 : vector<1x256xf32> to vector<8x256xf32>
    %16 = arith.addf %13, %15 : vector<8x256xf32>
    %17 = vector.extract_strided_slice %16 {offsets = [0, 0], sizes = [8, 32], strides = [1, 1]} : vector<8x256xf32> to vector<8x32xf32>
    %18 = arith.negf %17 : vector<8x32xf32>
    %19 = math.exp %18 : vector<8x32xf32>
    %cst_11 = arith.constant 1.000000e+00 : f32
    %20 = vector.broadcast %cst_11 : f32 to vector<8x32xf32>
    %21 = arith.addf %20, %19 : vector<8x32xf32>
    %22 = arith.divf %20, %21 : vector<8x32xf32>
    %23 = vector.extract_strided_slice %16 {offsets = [0, 128], sizes = [8, 32], strides = [1, 1]} : vector<8x256xf32> to vector<8x32xf32>
    %cst_12 = arith.constant 1.000000e+00 : f32
    %24 = vector.broadcast %cst_12 : f32 to vector<8x32xf32>
    %25 = arith.subf %24, %22 : vector<8x32xf32>
    %26 = arith.mulf %25, %11 : vector<8x32xf32>
    %27 = arith.mulf %22, %23 : vector<8x32xf32>
    %28 = arith.addf %26, %27 : vector<8x32xf32>
    %cst_13 = arith.constant 0.000000e+00 : f32
    %29 = vector.broadcast %cst_13 : f32 to vector<8x32xf32>
    %30 = arith.maximumf %23, %29 : vector<8x32xf32>
    %c0_14 = arith.constant 0 : index
    %c0_15 = arith.constant 0 : index
    %31 = vector.load %arg6[%c0_14, %c0_15] : memref<32x32xf32, #tpu.memory_space<vmem>>, vector<32x32xf32>
    %cst_16 = arith.constant dense<0.000000e+00> : vector<8x32xf32>
    %32 = tpu.matmul %30, %31, %cst_16 {dimension_numbers = #tpu.dot_dimension_numbers<[1], [0], [0], [1], [0, 0, 1, 1], [], []>} : vector<8x32xf32>, vector<32x32xf32>, vector<8x32xf32> -> vector<8x32xf32>
    %c0_17 = arith.constant 0 : index
    %c0_18 = arith.constant 0 : index
    %33 = vector.load %arg7[%c0_17, %c0_18] : memref<1x32xf32, #tpu.memory_space<vmem>>, vector<1x32xf32>
    %34 = vector.broadcast %33 : vector<1x32xf32> to vector<8x32xf32>
    %35 = arith.addf %32, %34 : vector<8x32xf32>
    %cst_19 = arith.constant 5.000000e-01 : f32
    %36 = vector.broadcast %cst_19 : f32 to vector<8x32xf32>
    %37 = arith.mulf %36, %35 : vector<8x32xf32>
    %38 = math.exp %37 : vector<8x32xf32>
    %39 = arith.mulf %2, %38 : vector<8x32xf32>
    %40 = arith.addf %28, %39 : vector<8x32xf32>
    %cst_20 = arith.constant 0.000000e+00 : f32
    %41 = vector.broadcast %cst_20 : f32 to vector<8x32xf32>
    %42 = tpu.concatenate %40, %28, %35, %41 in 1 : vector<8x32xf32>, vector<8x32xf32>, vector<8x32xf32>, vector<8x32xf32> -> vector<8x128xf32>
    %c0_21 = arith.constant 0 : index
    %c0_22 = arith.constant 0 : index
    %43 = vector.load %arg8[%c0_21, %c0_22] : memref<8x128xf32, #tpu.memory_space<vmem>>, vector<8x128xf32>
    tpu.vector_store %arg8[%c0_21, %c0_22], %42 {strides = array<i32>} : memref<8x128xf32, #tpu.memory_space<vmem>>, vector<8x128xf32>,
    return
  }
  func.func @transform_0(%arg0: i32) -> (i32, i32) {
    %c0_i32 = arith.constant 0 : i32
    %c0_i32_0 = arith.constant 0 : i32
    return %arg0, %c0_i32 : i32, i32
  }
  func.func @transform_1(%arg0: i32) -> (i32, i32) {
    %c0_i32 = arith.constant 0 : i32
    %c0_i32_0 = arith.constant 0 : i32
    %c0_i32_1 = arith.constant 0 : i32
    return %c0_i32, %c0_i32_0 : i32, i32
  }
  func.func @transform_2(%arg0: i32) -> (i32, i32) {
    %c0_i32 = arith.constant 0 : i32
    %c0_i32_0 = arith.constant 0 : i32
    %c0_i32_1 = arith.constant 0 : i32
    return %c0_i32, %c0_i32_0 : i32, i32
  }
  func.func @transform_3(%arg0: i32) -> (i32, i32) {
    %c0_i32 = arith.constant 0 : i32
    %c0_i32_0 = arith.constant 0 : i32
    %c0_i32_1 = arith.constant 0 : i32
    return %c0_i32, %c0_i32_0 : i32, i32
  }
  func.func @transform_4(%arg0: i32) -> (i32, i32) {
    %c0_i32 = arith.constant 0 : i32
    %c0_i32_0 = arith.constant 0 : i32
    %c0_i32_1 = arith.constant 0 : i32
    return %c0_i32, %c0_i32_0 : i32, i32
  }
  func.func @transform_5(%arg0: i32) -> (i32, i32) {
    %c0_i32 = arith.constant 0 : i32
    %c0_i32_0 = arith.constant 0 : i32
    %c0_i32_1 = arith.constant 0 : i32
    return %c0_i32, %c0_i32_0 : i32, i32
  }
  func.func @transform_6(%arg0: i32) -> (i32, i32) {
    %c0_i32 = arith.constant 0 : i32
    %c0_i32_0 = arith.constant 0 : i32
    %c0_i32_1 = arith.constant 0 : i32
    return %c0_i32, %c0_i32_0 : i32, i32
  }
  func.func @transform_7(%arg0: i32) -> (i32, i32) {
    %c0_i32 = arith.constant 0 : i32
    %c0_i32_0 = arith.constant 0 : i32
    return %arg0, %c0_i32 : i32, i32
  }
}

</mosaic_0001>

<bundles_post_ra>
// kernel: tpu_custom_call.1
= control target key start
LH: loop header
LB: loop body
LE: loop exit
PB: predicated region body
PF: predicated region fallthrough
CT: control target
= control target key end

     0   :  { %12 = vsyncpa [#allocation3], 0  ;;  %s776_s0 = inlined_call_operand.hbm [shape: f32[8,64], index: 0, kind: input, shape index: {}]   ;;  %s777_s1 = inlined_call_operand.hbm [shape: f32[32,160], index: 1, kind: input, shape index: {}]   ;;  %s778_s2 = inlined_call_operand.vmem [shape: f32[1,160], index: 2, kind: input, shape index: {}]   ;;  %s779_s3 = inlined_call_operand.hbm [shape: f32[128,256], index: 3, kind: input, shape index: {}]   ;;  %s780_s4 = inlined_call_operand.vmem [shape: f32[1,256], index: 4, kind: input, shape index: {}]   ;;  %s781_s5 = inlined_call_operand.hbm [shape: f32[32,32], index: 5, kind: input, shape index: {}]   ;;  %s782_s6 = inlined_call_operand.vmem [shape: f32[1,32], index: 6, kind: input, shape index: {}]   ;;  %s783_s7 = inlined_call_operand.hbm [shape: f32[8,128], index: 7, kind: output, shape index: {}]  }
   0x1   :  { %13 = vsyncpa [#allocation6], 0 }
   0x2   :  { %14 = vsyncpa [#allocation9], 0 }
   0x3   :  { %15 = vsyncpa [#allocation4], 0  ;;  %s636_s24 = smov [#allocation5]   ;;  %s518_s28 = scalar_lea.hbm %s777_s1, 1024 }
   0x4   :  { %s31_s25 = sshll.u32 %s636_s24, 4  ;;  %p519_p0 = scmp.ne.s32.totalorder %s777_s1, %s518_s28  ;;  %s32_s25 = int_to_ptr.vmem [resolvable:$true] %s31_s25 }
   0x5   :  { %p522_p1 = scmp.lt.u32.totalorder %s518_s28, %s777_s1 }
   0x7   :  { %p524_p2 = pnand %p522_p1, %p519_p0 }
   0x9   :  { %527 = shalt.err (!%p524_p2)
}
   0xa   :  { %s528_s10 = scalar_lea.vmem %s32_s25, 1024  ;;  %p533_p4 = scmp.lt.s32.totalorder %s32_s25, %s32_s25 }
   0xb   :  { %p529_p3 = scmp.ne.s32.totalorder %s32_s25, %s528_s10  ;;  %p534_p5 = scmp.lt.s32.totalorder %s528_s10, %s528_s10 }
   0xd   :  { %p535_p6 = por %p534_p5, %p533_p4 }
   0xf   :  { %p536_p7 = pnand %p535_p6, %p529_p3 }
  0x11   :  { %539 = shalt.err (!%p536_p7)
}
  0x12   :  { %s637_s11 = smov 256   ;;  %s638_s12 = smov 16  }
  0x13   :  { %37 = dma.hbm_to_vmem [thread:$0]  %s777_s1, 1024, %s32_s25, [#allocation6], %s637_s11, %s637_s11, %s638_s12  }
  0x14   :  { %s639_s15 = smov [#allocation2]   ;;  %s640_s17 = smov [#allocation7]  }
  0x15   :  { %s22_s16 = sshll.u32 %s639_s15, 4  ;;  %s45_s18 = sshll.u32 %s640_s17, 4  ;;  %s23_s16 = int_to_ptr.vmem [resolvable:$true] %s22_s16  ;;  %s46_s18 = int_to_ptr.vmem [resolvable:$true] %s45_s18 }
  0x16   :  { %s540_s21 = scalar_lea.hbm %s776_s0, 128 }
  0x17   :  { %p541_p8 = scmp.ne.s32.totalorder %s776_s0, %s540_s21  ;;  %p544_p9 = scmp.lt.u32.totalorder %s540_s21, %s776_s0 }
  0x19   :  { %p546_p10 = pnand %p544_p9, %p541_p8 }
  0x1b   :  { %549 = shalt.err (!%p546_p10)
}
  0x1c   :  { %s550_s1 = scalar_lea.vmem %s23_s16, 128  ;;  %p555_p12 = scmp.lt.s32.totalorder %s23_s16, %s23_s16 }
  0x1d   :  { %p551_p11 = scmp.ne.s32.totalorder %s23_s16, %s550_s1  ;;  %p556_p13 = scmp.lt.s32.totalorder %s550_s1, %s550_s1 }
  0x1f   :  { %p557_p0 = por %p556_p13, %p555_p12 }
  0x21   :  { %p558_p1 = pnand %p557_p0, %p551_p11 }
  0x23   :  { %561 = shalt.err (!%p558_p1)
}
  0x24   :  { %25 = dma.hbm_to_vmem [thread:$0]  %s776_s0, 128, %s23_s16, [#allocation3]  }
  0x25   :  { %s562_s30 = scalar_lea.hbm %s779_s3, 4096 }
  0x26   :  { %p563_p2 = scmp.ne.s32.totalorder %s779_s3, %s562_s30  ;;  %p566_p3 = scmp.lt.u32.totalorder %s562_s30, %s779_s3 }
  0x28   :  { %p568_p4 = pnand %p566_p3, %p563_p2 }
  0x2a   :  { %571 = shalt.err (!%p568_p4)
}
  0x2b   :  { %s572_s14 = scalar_lea.vmem %s46_s18, 4096  ;;  %p577_p6 = scmp.lt.s32.totalorder %s46_s18, %s46_s18 }
  0x2c   :  { %p573_p5 = scmp.ne.s32.totalorder %s46_s18, %s572_s14  ;;  %p578_p7 = scmp.lt.s32.totalorder %s572_s14, %s572_s14 }
  0x2e   :  { %p579_p8 = por %p578_p7, %p577_p6 }
  0x30   :  { %p580_p9 = pnand %p579_p8, %p573_p5 }
  0x32   :  { %583 = shalt.err (!%p580_p9)
}
  0x33   :  { %51 = dma.hbm_to_vmem [thread:$0]  %s779_s3, 4096, %s46_s18, [#allocation6], %s637_s11, %s637_s11, %s638_s12  }
  0x34   :  { %s641_s16 = smov [#allocation8]   ;;  %s584_s21 = scalar_lea.hbm %s781_s5, 512 }
  0x35   :  { %s59_s17 = sshll.u32 %s641_s16, 4  ;;  %p585_p10 = scmp.ne.s32.totalorder %s781_s5, %s584_s21  ;;  %s60_s17 = int_to_ptr.vmem [resolvable:$true] %s59_s17 }
  0x36   :  { %p588_p11 = scmp.lt.u32.totalorder %s584_s21, %s781_s5 }
  0x38   :  { %p590_p12 = pnand %p588_p11, %p585_p10 }
  0x3a   :  { %593 = shalt.err (!%p590_p12)
}
  0x3b   :  { %s594_s1 = scalar_lea.vmem %s60_s17, 512  ;;  %p599_p0 = scmp.lt.s32.totalorder %s60_s17, %s60_s17 }
  0x3c   :  { %p595_p13 = scmp.ne.s32.totalorder %s60_s17, %s594_s1  ;;  %p600_p1 = scmp.lt.s32.totalorder %s594_s1, %s594_s1 }
  0x3e   :  { %p601_p2 = por %p600_p1, %p599_p0 }
  0x40   :  { %p602_p3 = pnand %p601_p2, %p595_p13 }
  0x42   :  { %605 = shalt.err (!%p602_p3)
}
  0x43   :  { %s642_s3 = smov 128   ;;  %s643_s11 = smov 8  }
  0x44   :  { %65 = dma.hbm_to_vmem [thread:$0]  %s781_s5, 512, %s60_s17, [#allocation9], %s642_s3, %s642_s3, %s643_s11  }
  0x45   :  { %628 = dma.done.wait [#allocation3], 128  }
  0x46   :  { %629 = vsyncadd [#allocation3], 4294967168 }
  0x47   :  { %630 = dma.done.wait [#allocation6], 5120  }
  0x48   :  { %631 = vsyncadd [#allocation6], 4294962176 }
  0x49   :  { %632 = dma.done.wait [#allocation9], 512  }
  0x4a   :  { %633 = vsyncadd [#allocation9], 4294966784  ;;  %v644_v0 = vmov 0.0   ;;  %v82_v1 = vld [vmem:[#allocation5 + $0x8] sm:$0xff]  ;;  %v84_v2 = vld [vmem:[#allocation5 + $0x18] sm:$0xff]  ;;  %vm101_vm0 = vcmask 261120  }
  0x4b   :  { %169 = vmatprep.mubr.f32.mxu0 %v644_v0  ;;  %285 = vmatprep.mubr.f32.mxu1 %v644_v0  ;;  %v81_v3 = vld [vmem:[#allocation5] sm:$0xff]  ;;  %v451_v4 = vpack.c.bf16 %v84_v2, %v82_v1  ;;  %v83_v5 = vld [vmem:[#allocation5 + $0x10] sm:$0xff]  ;;  %v86_v6 = vld [vmem:[#allocation5 + $0x28] sm:$0xff]  ;;  %v645_v1 = vmov 0.0|0.0   ;;  %vm646_vm1 = vmmov 0   ;;  %s648_s30 = smov 64  }
  0x4c   :  { %v88_v7 = vld [vmem:[#allocation5 + $0x38] sm:$0xff]  ;;  %v453_v8 = vpack.c.bf16 %v83_v5, %v81_v3  ;;  %v85_v10 = vld [vmem:[#allocation5 + $0x20] sm:$0xff]  ;;  %v87_v11 = vld [vmem:[#allocation5 + $0x30] sm:$0xff]  ;;  %v91_v3 = vlaneseq  ;;  %s649_s8 = smov 96   ;;  %vm409_vm2 = vcmask 523264   ;;  %vm411_vm3 = vcmask 785408  }
  0x4d   :  { %v455_v9 = vpack.c.bf16 %v88_v7, %v86_v6  ;;  %452 = vmatprep.subr.bf16.mxu0 %v451_v4  ;;  %v178_v12 = vld [vmem:[#allocation7 + $0x8] sm:$0xff]  ;;  %v180_v13 = vld [vmem:[#allocation7 + $0x18] sm:$0xff]  ;;  %v177_v14 = vld [vmem:[#allocation7] sm:$0xff]  ;;  %v457_v15 = vpack.c.bf16 %v87_v11, %v85_v10 }
  0x4e   :  { %454 = vmatpush1.bf16.msra.mxu0 %v453_v8  ;;  %v459_v16 = vpack.c.bf16 %v180_v13, %v178_v12  ;;  %v179_v17 = vld [vmem:[#allocation7 + $0x10] sm:$0xff]  ;;  %v182_v18 = vld [vmem:[#allocation7 + $0x28] sm:$0xff]  ;;  %v184_v19 = vld [vmem:[#allocation7 + $0x38] sm:$0xff]  ;;  %v92_v4 = vshrl.u32 %v91_v3, 7 }
  0x4f   :  { %456 = vmatprep.subr.bf16.mxu0 %v455_v9  ;;  %v461_v20 = vpack.c.bf16 %v179_v17, %v177_v14  ;;  %v463_v21 = vpack.c.bf16 %v184_v19, %v182_v18  ;;  %v181_v22 = vld [vmem:[#allocation7 + $0x20] sm:$0xff]  ;;  %v183_v23 = vld [vmem:[#allocation7 + $0x30] sm:$0xff]  ;;  %v186_v24 = vld [vmem:[#allocation7 + $0x48] sm:$0xff] }
  0x50   :  { %460 = vmatprep.subr.bf16.mxu1 %v459_v16  ;;  %v188_v25 = vld [vmem:[#allocation7 + $0x58] sm:$0xff]  ;;  %v465_v26 = vpack.c.bf16 %v183_v23, %v181_v22  ;;  %v185_v29 = vld [vmem:[#allocation7 + $0x40] sm:$0xff]  ;;  %v187_v30 = vld [vmem:[#allocation7 + $0x50] sm:$0xff]  ;;  %v93_v5 = vsub.s32 0, %v92_v4  ;;  %v97_v16 = vsub.s32 1, %v92_v4 }
  0x51   :  { %462 = vmatpush1.bf16.msra.mxu1 %v461_v20  ;;  %v747_v27 = vld [vmem:[#allocation2] sm:$0xff]  ;;  %v467_v28 = vpack.c.bf16 %v188_v25, %v186_v24  ;;  %v190_v31 = vld [vmem:[#allocation7 + $0x68] sm:$0xff]  ;;  %v469_v33 = vpack.c.bf16 %v187_v30, %v185_v29  ;;  %v189_v35 = vld [vmem:[#allocation7 + $0x60] sm:$0xff] }
  0x52   :  { %458 = vmatpush1.bf16.msra.mxu0 %v457_v15  ;;  %464 = vmatprep.subr.bf16.mxu1 %v463_v21  ;;  %v192_v32 = vld [vmem:[#allocation7 + $0x78] sm:$0xff]  ;;  %v191_v36 = vld [vmem:[#allocation7 + $0x70] sm:$0xff]  ;;  %v194_v37 = vld [vmem:[#allocation7 + $0x88] sm:$0xff] }
  0x53   :  { %v471_v34 = vpack.c.bf16 %v192_v32, %v190_v31  ;;  %v196_v38 = vld [vmem:[#allocation7 + $0x98] sm:$0xff]  ;;  %v473_v39 = vpack.c.bf16 %v191_v36, %v189_v35  ;;  %v193_v41 = vld [vmem:[#allocation7 + $0x80] sm:$0xff]  ;;  %v195_v42 = vld [vmem:[#allocation7 + $0x90] sm:$0xff]  ;;  %491 = vmatprep.subr.bf16.mxu0 %v645_v1 }
  0x54   :  { %v475_v40 = vpack.c.bf16 %v196_v38, %v194_v37  ;;  %v198_v43 = vld [vmem:[#allocation7 + $0xa8] sm:$0xff]  ;;  %v200_v44 = vld [vmem:[#allocation7 + $0xb8] sm:$0xff]  ;;  %v477_v45 = vpack.c.bf16 %v195_v42, %v193_v41  ;;  %v197_v47 = vld [vmem:[#allocation7 + $0xa0] sm:$0xff] }
  0x55   :  { %431 = vmatmul.mubr.msk.f32.vlgmr.msra.gmra.mrb[0].mxu0 %vm101_vm0, %v747_v27  ;;  %466 = vmatpush1.bf16.msra.mxu1 %v465_v26  ;;  %v479_v46 = vpack.c.bf16 %v200_v44, %v198_v43  ;;  %v199_v48 = vld [vmem:[#allocation7 + $0xb0] sm:$0xff]  ;;  %v202_v49 = vld [vmem:[#allocation7 + $0xc8] sm:$0xff]  ;;  %v204_v50 = vld [vmem:[#allocation7 + $0xd8] sm:$0xff] }
  0x56   :  { %468 = vmatprep.subr.bf16.mxu1 %v467_v28  ;;  %v481_v51 = vpack.c.bf16 %v199_v48, %v197_v47  ;;  %v483_v52 = vpack.c.bf16 %v204_v50, %v202_v49  ;;  %v201_v53 = vld [vmem:[#allocation7 + $0xc0] sm:$0xff]  ;;  %v203_v54 = vld [vmem:[#allocation7 + $0xd0] sm:$0xff]  ;;  %v206_v56 = vld [vmem:[#allocation7 + $0xe8] sm:$0xff]  ;;  %448 = vmatprep.mubr.msk.f32.mxu0 %vm646_vm1, %v644_v0 }
  0x57   :  { %v485_v55 = vpack.c.bf16 %v203_v54, %v201_v53  ;;  %v208_v57 = vld [vmem:[#allocation7 + $0xf8] sm:$0xff]  ;;  %v205_v59 = vld [vmem:[#allocation7 + $0xe0] sm:$0xff]  ;;  %v207_v60 = vld [vmem:[#allocation7 + $0xf0] sm:$0xff] }
  0x58   :  { %v487_v58 = vpack.c.bf16 %v208_v57, %v206_v56  ;;  %v489_v61 = vpack.c.bf16 %v207_v60, %v205_v59  ;;  %v303_v62 = vld [vmem:[#allocation8] sm:$0xff]  ;;  %v304_v63 = vld [vmem:[#allocation8 + $0x8] sm:$0xff]  ;;  %v89_v6 = vld [vmem:[%s778_s2] sm:$0x3]  ;;  %s647_s2 = smov 32  }
  0x59   :  { %470 = vmatpush1.bf16.msra.mxu1 %v469_v33  ;;  %v492_v2 = vpack.c.bf16 %v304_v63, %v303_v62  ;;  %v94_v7 = vrot.slane %v89_v6, %v93_v5  ;;  %v305_v12 = vld [vmem:[#allocation8 + $0x10] sm:$0xff]  ;;  %v306_v13 = vld [vmem:[#allocation8 + $0x18] sm:$0xff]  ;;  %v98_v0 = vrot.slane %v89_v6, %v97_v16 }
  0x5a   :  { %472 = vmatprep.subr.bf16.mxu1 %v471_v34  ;;  %v495_v14 = vpack.c.bf16 %v306_v13, %v305_v12  ;;  %v209_v15 = vld [vmem:[%s780_s4] sm:$0x3] }
  0x5b   :  { %493 = vmatpush3.bf16.msra.mxu0 %v492_v2  ;;  %v214_v17 = vrot.slane %v209_v15, %v93_v5  ;;  %v218_v18 = vrot.slane %v209_v15, %v97_v16  ;;  %v433_v34 = vld [vmem:[%s782_s6] ss:$0 sm:$0xff]  ;;  %s650_s6 = smov [#allocation10]  }
  0x5c   :  { %494 = vmatprep.subr.bf16.mxu0 %v645_v1  ;;  %s420_s9 = sshll.u32 %s650_s6, 4  ;;  %s421_s9 = int_to_ptr.vmem [resolvable:$true] %s420_s9 }
  0x5d   :  { %474 = vmatpush1.bf16.msra.mxu1 %v473_v39  ;;  %s606_s10 = scalar_lea.vmem %s421_s9, 128  ;;  %p611_p5 = scmp.lt.s32.totalorder %s421_s9, %s421_s9 }
  0x5e   :  { %476 = vmatprep.subr.bf16.mxu1 %v475_v40  ;;  %p607_p4 = scmp.ne.s32.totalorder %s421_s9, %s606_s10  ;;  %p612_p6 = scmp.lt.s32.totalorder %s606_s10, %s606_s10 }
  0x5f   :  { %496 = vmatpush3.bf16.msra.mxu0 %v495_v14 }
  0x60   :  { %p613_p7 = por %p612_p6, %p611_p5 }
  0x61   :  { %478 = vmatpush1.bf16.msra.mxu1 %v477_v45 }
  0x62   :  { %480 = vmatprep.subr.bf16.mxu1 %v479_v46  ;;  %p614_p8 = pnand %p613_p7, %p607_p4 }
  0x65   :  { %482 = vmatpush1.bf16.msra.mxu1 %v481_v51 }
  0x66   :  { %484 = vmatprep.subr.bf16.mxu1 %v483_v52 }
  0x69   :  { %486 = vmatpush1.bf16.msra.mxu1 %v485_v55 }
  0x6a   :  { %488 = vmatprep.subr.bf16.mxu1 %v487_v58 }
  0x6d   :  { %490 = vmatpush1.bf16.msra.mxu1 %v489_v61 }
 0x128   :  { %v171_v8 = vpop.f32.mrb[0].mxu0 }
 0x129   :  { %v172_v9 = vadd.f32 %v171_v8, %v94_v7  ;;  %v173_v10 = vpop.f32.mrb[1].mxu0 }
 0x12a   :  { %v174_v29 = vadd.f32 %v173_v10, %v98_v0 }
 0x12b   :  { %v176_v11 = vmax.f32 %v172_v9, 0.0 }
 0x12d   :  { %286 = vmatmul.mubr.f32.vlgmr.msra.gmra.mrb[0].mxu1 %v176_v11 }
 0x200   :  { %v287_v19 = vpop.f32.mrb[0].mxu1 }
 0x201   :  { %v288_v20 = vadd.f32 %v287_v19, %v214_v17  ;;  %v289_v21 = vpop.f32.mrb[1].mxu1 }
 0x202   :  { %v290_v22 = vadd.f32 %v289_v21, %v218_v18 }
 0x203   :  { %v432_v23 = vmul.f32 -1.442695, %v288_v20 }
 0x204   :  { %v302_v24 = vmax.f32 %v290_v22, 0.0 }
 0x205   :  { %512 = vpow2.f32 %v432_v23 }
 0x206   :  { %449 = vmatmul.mubr.msk.f32.vlgmr.msra.gmra.mrb[2].mxu0 %vm101_vm0, %v302_v24 }
 0x20f   :  { %v513_v25 = vpop.eup %512 }
 0x210   :  { %v295_v26 = vadd.f32 1.0, %v513_v25 }
 0x212   :  { %514 = vrcp.f32 %v295_v26 }
 0x21c   :  { %v515_v28 = vpop.eup %514 }
 0x21d   :  { %v300_v30 = vmul.f32 %v515_v28, %v290_v22  ;;  %v298_v31 = vsub.f32 1.0, %v515_v28 }
 0x21f   :  { %v299_v32 = vmul.f32 %v298_v31, %v174_v29 }
 0x221   :  { %v301_v33 = vadd.f32 %v300_v30, %v299_v32 }
 0x223   :  { %401 = vrot.lane.b32.xlu1 %v301_v33, %s647_s2 }
 0x295   :  { %v402_v43 = vpop.permute.xlu1 %401 }
 0x2d9   :  { %v383_v35 = vpop.f32.mrb[2].mxu0 }
 0x2da   :  { %v384_v36 = vadd.f32 %v433_v34, %v383_v35  ;;  %v450_v37 = vpop.f32.mrb[3].mxu0 }
 0x2dc   :  { %v387_v38 = vmul.f32 0.5, %v384_v36  ;;  %405 = vrot.lane.b32.xlu1 %v384_v36, %s648_s30 }
 0x2de   :  { %v388_v39 = vmul.f32 1.442695, %v387_v38 }
 0x2e0   :  { %516 = vpow2.f32 %v388_v39 }
 0x2ea   :  { %v517_v40 = vpop.eup %516 }
 0x2eb   :  { %391 = vrot.lane.b32.xlu0 %v517_v40, %s647_s2 }
 0x34e   :  { %v406_v46 = vpop.permute.xlu1 %405 }
 0x35d   :  { %v392_v41 = vpop.permute.xlu0 %391 }
 0x35e   :  { %v394_v42 = vmul.f32 %v392_v41, %v747_v27 }
 0x360   :  { %396 = vrot.lane.b32.xlu0 %v394_v42, %s649_s8 }
 0x3d2   :  { %v397_v44 = vpop.permute.xlu0 %396 }
 0x3d3   :  { %v399_v45 = vadd.f32 %v397_v44, %v301_v33 }
 0x3d5   :  { %v408_v47 = vsel %vm101_vm0, %v399_v45, %v402_v43 }
 0x3d6   :  { %v410_v48 = vsel %vm409_vm2, %v408_v47, %v406_v46 }
 0x3d7   :  { %v412_v49 = vsel %vm411_vm3, %v410_v48, 0.0 }
 0x3d8   :  { %413 = vst [vmem:[#allocation10] sm:$0xff] %v412_v49 }
 0x3d9   :  { %617 = shalt.err (!%p614_p8)
}
 0x3da   :  { %s618_s0 = scalar_lea.hbm %s783_s7, 128 }
 0x3db   :  { %p619_p9 = scmp.ne.s32.totalorder %s783_s7, %s618_s0  ;;  %p622_p10 = scmp.lt.u32.totalorder %s618_s0, %s783_s7 }
 0x3dd   :  { %p624_p11 = pnand %p622_p10, %p619_p9 }
 0x3df   :  { %627 = shalt.err (!%p624_p11)
}
 0x3e0   :  { %423 = dma.vmem_to_hbm [thread:$0]  %s421_s9, 128, %s783_s7, [#allocation4]  }
 0x3e1   :  { %634 = dma.done.wait [#allocation4], 128  }
 0x3e2   :  { %635 = vsyncadd [#allocation4], 4294967168 }
 0x3e3   :  { %427 = vsyncpa [#allocation3], 1 }
 0x3e4   :  { %428 = vsyncpa [#allocation6], 1 }
 0x3e5   :  { %429 = vsyncpa [#allocation9], 1 }
 0x3e6   :  { %430 = vsyncpa [#allocation4], 1 }

</bundles_post_ra>
